<compile_context>
chip_gen: v5e
topology: v5e:2x2
jax: 0.10.0
libtpu: 0.0.40
codegen_flags: <defaults>
</compile_context>

<pallas_src>
import functools

import jax
import jax.numpy as jnp
from jax import lax
from jax.experimental import pallas as pl
from jax.experimental.pallas import tpu as pltpu

EPS = 1e-5
LANE = 128
SUBLANE = 8


def _round_up(x, m):
    return (x + m - 1) // m * m


# --------------------------------------------------------------------------------------
# Kernel 1: one im2col matmul per row tile + per-tile BN partial sums (sum, sum of sq).
# --------------------------------------------------------------------------------------
def conv_stats_kernel(p_ref, w_ref, conv_ref, sum_ref, sq_ref):
    # p_ref:    (TILE_M, K)       bf16  im2col patches for this row tile
    # w_ref:    (K, C_pad)        bf16  weight slab, (ky, kx, cin) x cout
    # conv_ref: (TILE_M, C_pad)   f32   conv output tile (lane-dense)
    # sum_ref:  (SUBLANE, C_pad)  f32   sublane-partial per-channel sums for this tile
    # sq_ref:   (SUBLANE, C_pad)  f32   sublane-partial per-channel sums of squares
    acc = jnp.dot(p_ref[...], w_ref[...], preferred_element_type=jnp.float32)
    conv_ref[...] = acc

    tile_m, c_pad = conv_ref.shape
    # Group rows by sublane (layout-preserving reshape) and reduce over groups:
    # pure vreg-wise VALU adds, no cross-sublane XLU work inside the kernel.
    r = acc.reshape(tile_m // SUBLANE, SUBLANE, c_pad)
    sum_ref[...] = jnp.sum(r, axis=0)
    sq_ref[...] = jnp.sum(r * r, axis=0)


# --------------------------------------------------------------------------------------
# Kernel 2: fused BatchNorm affine  y = conv * scale + shift   (no ReLU in forward()).
# --------------------------------------------------------------------------------------
def bn_apply_kernel(conv_ref, scale_ref, shift_ref, o_ref):
    o_ref[...] = conv_ref[...] * scale_ref[...] + shift_ref[...]


# --------------------------------------------------------------------------------------
# Wrapper
# --------------------------------------------------------------------------------------
@functools.partial(jax.jit, static_argnames=("stride", "padding", "dilation", "tile_m"))
def basic_conv2d(x_nchw, w_oihw, gamma, beta, *, stride=1, padding=1, dilation=1,
                 tile_m=256, eps=EPS):
    """x: (N, Cin, H, W) f32, w: (Cout, Cin, KH, KW) f32 -> (N, Cout, Ho, Wo) f32."""
    N, Cin, H, W = x_nchw.shape
    Cout, _, KH, KW = w_oihw.shape
    Ho = (H + 2 * padding - dilation * (KH - 1) - 1) // stride + 1
    Wo = (W + 2 * padding - dilation * (KW - 1) - 1) // stride + 1

    # ---- im2col in the wrapper (kernel only sees lane-dense 2-D operands) ----
    # TODO(synk): the im2col slab costs ~KH*KW x input HBM traffic; a halo-DMA kernel
    # would avoid it for very memory-light convs.
    x_nhwc = jnp.transpose(x_nchw, (0, 2, 3, 1))
    xp = jnp.pad(x_nhwc, ((0, 0), (padding, padding), (padding, padding), (0, 0)))
    taps = []
    for ky in range(KH):
        for kx in range(KW):
            y0, x0 = ky * dilation, kx * dilation
            taps.append(xp[:, y0:y0 + stride * Ho:stride, x0:x0 + stride * Wo:stride, :])
    M = N * Ho * Wo
    K = KH * KW * Cin
    patches = jnp.concatenate(taps, axis=-1).reshape(M, K)
    w_slab = jnp.transpose(w_oihw, (2, 3, 1, 0)).reshape(K, Cout)   # (ky,kx,cin) x cout

    # ---- padding for TPU-friendly tiles: rows -> tile multiple, Cout -> 128 lanes ----
    tile_m = min(tile_m, _round_up(M, SUBLANE))
    M_pad = _round_up(M, tile_m)
    C_pad = _round_up(Cout, LANE)
    n_tiles = M_pad // tile_m

    patches = jnp.pad(patches, ((0, M_pad - M), (0, 0))).astype(jnp.bfloat16)
    w_slab = jnp.pad(w_slab, ((0, 0), (0, C_pad - Cout))).astype(jnp.bfloat16)

    cparams = pltpu.CompilerParams(
        dimension_semantics=("parallel",),
        vmem_limit_bytes=32 * 1024 * 1024,
    )

    # ---- pass 1: conv tiles + partial channel statistics ----
    conv2d, psum, psq = pl.pallas_call(
        conv_stats_kernel,
        out_shape=(
            jax.ShapeDtypeStruct((M_pad, C_pad), jnp.float32),
            jax.ShapeDtypeStruct((n_tiles * SUBLANE, C_pad), jnp.float32),
            jax.ShapeDtypeStruct((n_tiles * SUBLANE, C_pad), jnp.float32),
        ),
        grid=(n_tiles,),
        in_specs=[
            pl.BlockSpec((tile_m, K), lambda i: (i, 0)),
            pl.BlockSpec((K, C_pad), lambda i: (0, 0)),
        ],
        out_specs=(
            pl.BlockSpec((tile_m, C_pad), lambda i: (i, 0)),
            pl.BlockSpec((SUBLANE, C_pad), lambda i: (i, 0)),
            pl.BlockSpec((SUBLANE, C_pad), lambda i: (i, 0)),
        ),
        compiler_params=cparams,
    )(patches, w_slab)

    # ---- finalize BN (tiny per-channel math; padded rows contribute exact zeros) ----
    count = jnp.float32(M)
    mean = jnp.sum(psum, axis=0) / count
    var = jnp.maximum(jnp.sum(psq, axis=0) / count - mean * mean, 0.0)   # biased var
    gamma_p = jnp.pad(gamma, (0, C_pad - Cout))
    beta_p = jnp.pad(beta, (0, C_pad - Cout))
    scale = gamma_p * lax.rsqrt(var + eps)
    shift = beta_p - mean * scale

    # ---- pass 2: apply fused scale/shift per tile ----
    out2d = pl.pallas_call(
        bn_apply_kernel,
        out_shape=jax.ShapeDtypeStruct((M_pad, C_pad), jnp.float32),
        grid=(n_tiles,),
        in_specs=[
            pl.BlockSpec((tile_m, C_pad), lambda i: (i, 0)),
            pl.BlockSpec((1, C_pad), lambda i: (0, 0)),
            pl.BlockSpec((1, C_pad), lambda i: (0, 0)),
        ],
        out_specs=pl.BlockSpec((tile_m, C_pad), lambda i: (i, 0)),
        compiler_params=cparams,
    )(conv2d, scale.reshape(1, C_pad), shift.reshape(1, C_pad))

    out = out2d[:M, :Cout].reshape(N, Ho, Wo, Cout)
    return jnp.transpose(out, (0, 3, 1, 2))


# --------------------------------------------------------------------------------------
# Pure-JAX reference (f32) for verification
# --------------------------------------------------------------------------------------
def reference(x_nchw, w_oihw, gamma, beta, *, stride=1, padding=1, dilation=1, eps=EPS):
    Cout = w_oihw.shape[0]
    y = lax.conv_general_dilated(
        x_nchw, w_oihw, window_strides=(stride, stride),
        padding=((padding, padding), (padding, padding)),
        rhs_dilation=(dilation, dilation),
        dimension_numbers=("NCHW", "OIHW", "NCHW"))
    mean = jnp.mean(y, axis=(0, 2, 3), keepdims=True)
    var = jnp.mean((y - mean) ** 2, axis=(0, 2, 3), keepdims=True)
    y = (y - mean) * lax.rsqrt(var + eps)
    return y * gamma.reshape(1, Cout, 1, 1) + beta.reshape(1, Cout, 1, 1)


if __name__ == "__main__":
    N, Cin, H, W = 2, 4, 16, 16
    Cout, KH, KW = 8, 3, 3

    key = jax.random.PRNGKey(0)
    kx, kw, kg, kb = jax.random.split(key, 4)
    x = jax.random.normal(kx, (N, Cin, H, W), jnp.float32)
    w = jax.random.normal(kw, (Cout, Cin, KH, KW), jnp.float32) * 0.1
    gamma = 1.0 + 0.1 * jax.random.normal(kg, (Cout,), jnp.float32)
    beta = 0.1 * jax.random.normal(kb, (Cout,), jnp.float32)

    out = basic_conv2d(x, w, gamma, beta, stride=1, padding=1, dilation=1)
    out = jax.block_until_ready(out)

    ref = reference(x, w, gamma, beta, stride=1, padding=1, dilation=1)
    assert out.shape == ref.shape == (N, Cout, H, W)
    err = float(jnp.max(jnp.abs(out - ref)))
    # bf16 MXU operands (f32 accumulate) -> tolerance relaxed vs the old pure-f32 path.
    assert err < 5e-2, f"mismatch vs JAX reference: max abs err = {err}"

    print("KERNEL_OK")
</pallas_src>

<mosaic_0001>
module attributes {stable_mosaic.version = 11 : i64} {
  func.func @conv_stats_kernel(%arg0: i32, %arg1: memref<256x36xbf16, #tpu.memory_space<vmem>>, %arg2: memref<36x128xbf16, #tpu.memory_space<vmem>>, %arg3: memref<256x128xf32, #tpu.memory_space<vmem>>, %arg4: memref<8x128xf32, #tpu.memory_space<vmem>>, %arg5: memref<8x128xf32, #tpu.memory_space<vmem>>) attributes {dimension_semantics = [#tpu.dimension_semantics<parallel>], iteration_bounds = array<i64: 2>, scalar_prefetch = 0 : i64, scratch_operands = 0 : i64, tpu.core_type = #tpu.core_type<tc>, window_params = [{transform_indices = @transform_0, window_bounds = array<i64: 256, 36>}, {pipeline_mode = #tpu.pipeline_mode<synchronous>, transform_indices = @transform_1, window_bounds = array<i64: 36, 128>}, {transform_indices = @transform_2, window_bounds = array<i64: 256, 128>}, {transform_indices = @transform_3, window_bounds = array<i64: 8, 128>}, {transform_indices = @transform_4, window_bounds = array<i64: 8, 128>}]} {
    %c0 = arith.constant 0 : index
    %c0_0 = arith.constant 0 : index
    %0 = vector.load %arg1[%c0, %c0_0] : memref<256x36xbf16, #tpu.memory_space<vmem>>, vector<256x36xbf16>
    %c0_1 = arith.constant 0 : index
    %c0_2 = arith.constant 0 : index
    %1 = vector.load %arg2[%c0_1, %c0_2] : memref<36x128xbf16, #tpu.memory_space<vmem>>, vector<36x128xbf16>
    %cst = arith.constant dense<0.000000e+00> : vector<256x128xf32>
    %2 = tpu.matmul %0, %1, %cst {dimension_numbers = #tpu.dot_dimension_numbers<[1], [0], [0], [1], [0, 0, 1, 1], [], []>} : vector<256x36xbf16>, vector<36x128xbf16>, vector<256x128xf32> -> vector<256x128xf32>
    %c0_3 = arith.constant 0 : index
    %c0_4 = arith.constant 0 : index
    %3 = vector.load %arg3[%c0_3, %c0_4] : memref<256x128xf32, #tpu.memory_space<vmem>>, vector<256x128xf32>
    tpu.vector_store %arg3[%c0_3, %c0_4], %2 {strides = array<i32>} : memref<256x128xf32, #tpu.memory_space<vmem>>, vector<256x128xf32>,
    %4 = vector.shape_cast %2 : vector<256x128xf32> to vector<32x8x128xf32>
    %cst_5 = arith.constant dense<0.000000e+00> : vector<8x128xf32>
    %5 = vector.multi_reduction <add>, %4, %cst_5 [0] : vector<32x8x128xf32> to vector<8x128xf32>
    %c0_6 = arith.constant 0 : index
    %c0_7 = arith.constant 0 : index
    %6 = vector.load %arg4[%c0_6, %c0_7] : memref<8x128xf32, #tpu.memory_space<vmem>>, vector<8x128xf32>
    tpu.vector_store %arg4[%c0_6, %c0_7], %5 {strides = array<i32>} : memref<8x128xf32, #tpu.memory_space<vmem>>, vector<8x128xf32>,
    %7 = arith.mulf %4, %4 : vector<32x8x128xf32>
    %cst_8 = arith.constant dense<0.000000e+00> : vector<8x128xf32>
    %8 = vector.multi_reduction <add>, %7, %cst_8 [0] : vector<32x8x128xf32> to vector<8x128xf32>
    %c0_9 = arith.constant 0 : index
    %c0_10 = arith.constant 0 : index
    %9 = vector.load %arg5[%c0_9, %c0_10] : memref<8x128xf32, #tpu.memory_space<vmem>>, vector<8x128xf32>
    tpu.vector_store %arg5[%c0_9, %c0_10], %8 {strides = array<i32>} : memref<8x128xf32, #tpu.memory_space<vmem>>, vector<8x128xf32>,
    return
  }
  func.func @transform_0(%arg0: i32) -> (i32, i32) {
    %c0_i32 = arith.constant 0 : i32
    %c0_i32_0 = arith.constant 0 : i32
    return %arg0, %c0_i32 : i32, i32
  }
  func.func @transform_1(%arg0: i32) -> (i32, i32) {
    %c0_i32 = arith.constant 0 : i32
    %c0_i32_0 = arith.constant 0 : i32
    %c0_i32_1 = arith.constant 0 : i32
    return %c0_i32, %c0_i32_0 : i32, i32
  }
  func.func @transform_2(%arg0: i32) -> (i32, i32) {
    %c0_i32 = arith.constant 0 : i32
    %c0_i32_0 = arith.constant 0 : i32
    return %arg0, %c0_i32 : i32, i32
  }
  func.func @transform_3(%arg0: i32) -> (i32, i32) {
    %c0_i32 = arith.constant 0 : i32
    %c0_i32_0 = arith.constant 0 : i32
    return %arg0, %c0_i32 : i32, i32
  }
  func.func @transform_4(%arg0: i32) -> (i32, i32) {
    %c0_i32 = arith.constant 0 : i32
    %c0_i32_0 = arith.constant 0 : i32
    return %arg0, %c0_i32 : i32, i32
  }
}

module attributes {stable_mosaic.version = 11 : i64} {
  func.func @bn_apply_kernel(%arg0: i32, %arg1: memref<256x128xf32, #tpu.memory_space<vmem>>, %arg2: memref<1x128xf32, #tpu.memory_space<vmem>>, %arg3: memref<1x128xf32, #tpu.memory_space<vmem>>, %arg4: memref<256x128xf32, #tpu.memory_space<vmem>>) attributes {dimension_semantics = [#tpu.dimension_semantics<parallel>], iteration_bounds = array<i64: 2>, scalar_prefetch = 0 : i64, scratch_operands = 0 : i64, tpu.core_type = #tpu.core_type<tc>, window_params = [{transform_indices = @transform_0, window_bounds = array<i64: 256, 128>}, {pipeline_mode = #tpu.pipeline_mode<synchronous>, transform_indices = @transform_1, window_bounds = array<i64: 1, 128>}, {pipeline_mode = #tpu.pipeline_mode<synchronous>, transform_indices = @transform_2, window_bounds = array<i64: 1, 128>}, {transform_indices = @transform_3, window_bounds = array<i64: 256, 128>}]} {
    %c0 = arith.constant 0 : index
    %c0_0 = arith.constant 0 : index
    %0 = vector.load %arg1[%c0, %c0_0] : memref<256x128xf32, #tpu.memory_space<vmem>>, vector<256x128xf32>
    %c0_1 = arith.constant 0 : index
    %c0_2 = arith.constant 0 : index
    %1 = vector.load %arg2[%c0_1, %c0_2] : memref<1x128xf32, #tpu.memory_space<vmem>>, vector<1x128xf32>
    %2 = vector.broadcast %1 : vector<1x128xf32> to vector<256x128xf32>
    %3 = arith.mulf %0, %2 : vector<256x128xf32>
    %c0_3 = arith.constant 0 : index
    %c0_4 = arith.constant 0 : index
    %4 = vector.load %arg3[%c0_3, %c0_4] : memref<1x128xf32, #tpu.memory_space<vmem>>, vector<1x128xf32>
    %5 = vector.broadcast %4 : vector<1x128xf32> to vector<256x128xf32>
    %6 = arith.addf %3, %5 : vector<256x128xf32>
    %c0_5 = arith.constant 0 : index
    %c0_6 = arith.constant 0 : index
    %7 = vector.load %arg4[%c0_5, %c0_6] : memref<256x128xf32, #tpu.memory_space<vmem>>, vector<256x128xf32>
    tpu.vector_store %arg4[%c0_5, %c0_6], %6 {strides = array<i32>} : memref<256x128xf32, #tpu.memory_space<vmem>>, vector<256x128xf32>,
    return
  }
  func.func @transform_0(%arg0: i32) -> (i32, i32) {
    %c0_i32 = arith.constant 0 : i32
    %c0_i32_0 = arith.constant 0 : i32
    return %arg0, %c0_i32 : i32, i32
  }
  func.func @transform_1(%arg0: i32) -> (i32, i32) {
    %c0_i32 = arith.constant 0 : i32
    %c0_i32_0 = arith.constant 0 : i32
    %c0_i32_1 = arith.constant 0 : i32
    return %c0_i32, %c0_i32_0 : i32, i32
  }
  func.func @transform_2(%arg0: i32) -> (i32, i32) {
    %c0_i32 = arith.constant 0 : i32
    %c0_i32_0 = arith.constant 0 : i32
    %c0_i32_1 = arith.constant 0 : i32
    return %c0_i32, %c0_i32_0 : i32, i32
  }
  func.func @transform_3(%arg0: i32) -> (i32, i32) {
    %c0_i32 = arith.constant 0 : i32
    %c0_i32_0 = arith.constant 0 : i32
    return %arg0, %c0_i32 : i32, i32
  }
}

</mosaic_0001>

<bundles_post_ra>
// kernel: basic_conv2d.3
= control target key start
LH: loop header
LB: loop body
LE: loop exit
PB: predicated region body
PF: predicated region fallthrough
CT: control target
= control target key end

     0   :  { %s415_s12 = smov 0   ;;  %s574_s0 = inlined_call_operand.vmem [shape: f32[512,128], index: 0, kind: input, shape index: {}]   ;;  %s575_s1 = inlined_call_operand.vmem [shape: f32[1,128], index: 1, kind: input, shape index: {}]   ;;  %s576_s2 = inlined_call_operand.vmem [shape: f32[1,128], index: 2, kind: input, shape index: {}]   ;;  %s577_s3 = inlined_call_operand.vmem [shape: f32[512,128], index: 3, kind: output, shape index: {}]  }
   0x1 LB: > { %s366_s13 = sadd.s32 4294967295, %s393_s12   ;;  %p370_p0 = scmp.ge.s32.totalorder %s393_s12, 1  ;;  %s393_s12 = sphi %s415_s12, %s13_s12  }
   0x2   : > { %p138_p1 = scmp.lt.s32.totalorder %s393_s12, 3 }
   0x4   : > { %p139_p2 = pnand %p370_p0, %p138_p1 }
   0x5   : > { %s371_s14 = sshll.u32 (!%p139_p2), %s366_s13, 5 }
   0x6   : > { %142 = sbr.rel (%p139_p2) target bundleno = 51 (0x33), region = 32  ;;  %p163_p3 = scmp.lt.s32.totalorder (!%p139_p2), %s371_s14, 63 }
   0xb   : > { %s579_s14 = smov (!%p163_p3, %s371_s14), 63  ;;  %v426_v0 = vld [vmem:[%s575_s1] ss:$0 sm:$0xff] }
   0xc   : > { %s372_s17 = sshll.u32 %s579_s14, 3  ;;  %v436_v1 = vld [vmem:[%s576_s2] ss:$0 sm:$0xff] }
   0xd   : > { %s431_s20 = scalar_lea.vmem %s574_s0, %s372_s17  ;;  %s450_s25 = scalar_lea.vmem %s577_s3, %s372_s17 }
   0xe   : > { %v174_v2 = vld [vmem:[%s431_s20] sm:$0xff]  ;;  %v175_v3 = vld [vmem:[%s431_s20 + $0x8] sm:$0xff]  ;;  %v176_v4 = vld [vmem:[%s431_s20 + $0x10] sm:$0xff] }
   0xf   : > { %v210_v5 = vmul.f32 %v426_v0, %v174_v2  ;;  %v211_v6 = vmul.f32 %v426_v0, %v175_v3  ;;  %v212_v7 = vmul.f32 %v426_v0, %v176_v4  ;;  %v177_v8 = vld [vmem:[%s431_s20 + $0x18] sm:$0xff]  ;;  %v178_v9 = vld [vmem:[%s431_s20 + $0x20] sm:$0xff]  ;;  %v179_v10 = vld [vmem:[%s431_s20 + $0x28] sm:$0xff] }
  0x10   : > { %v213_v11 = vmul.f32 %v426_v0, %v177_v8  ;;  %v214_v12 = vmul.f32 %v426_v0, %v178_v9  ;;  %v215_v13 = vmul.f32 %v426_v0, %v179_v10  ;;  %v180_v14 = vld [vmem:[%s431_s20 + $0x30] sm:$0xff]  ;;  %v181_v15 = vld [vmem:[%s431_s20 + $0x38] sm:$0xff]  ;;  %v182_v16 = vld [vmem:[%s431_s20 + $0x40] sm:$0xff] }
  0x11   : > { %v246_v17 = vadd.f32 %v436_v1, %v210_v5  ;;  %v247_v18 = vadd.f32 %v436_v1, %v211_v6  ;;  %v248_v19 = vadd.f32 %v436_v1, %v212_v7  ;;  %v216_v20 = vmul.f32 %v426_v0, %v180_v14  ;;  %v183_v21 = vld [vmem:[%s431_s20 + $0x48] sm:$0xff]  ;;  %v184_v24 = vld [vmem:[%s431_s20 + $0x50] sm:$0xff]  ;;  %v185_v27 = vld [vmem:[%s431_s20 + $0x58] sm:$0xff] }
  0x12   : > { %v249_v22 = vadd.f32 %v436_v1, %v213_v11  ;;  %v217_v23 = vmul.f32 %v426_v0, %v181_v15  ;;  %v250_v25 = vadd.f32 %v436_v1, %v214_v12  ;;  %v218_v26 = vmul.f32 %v426_v0, %v182_v16  ;;  %v186_v30 = vld [vmem:[%s431_s20 + $0x60] sm:$0xff]  ;;  %v187_v33 = vld [vmem:[%s431_s20 + $0x68] sm:$0xff]  ;;  %v188_v36 = vld [vmem:[%s431_s20 + $0x70] sm:$0xff] }
  0x13   : > { %278 = vst [vmem:[%s450_s25] sm:$0xff] %v246_v17  ;;  %v251_v28 = vadd.f32 %v436_v1, %v215_v13  ;;  %v219_v29 = vmul.f32 %v426_v0, %v183_v21  ;;  %v252_v31 = vadd.f32 %v436_v1, %v216_v20  ;;  %v220_v32 = vmul.f32 %v426_v0, %v184_v24  ;;  %v189_v39 = vld [vmem:[%s431_s20 + $0x78] sm:$0xff]  ;;  %v190_v42 = vld [vmem:[%s431_s20 + $0x80] sm:$0xff]  ;;  %v191_v45 = vld [vmem:[%s431_s20 + $0x88] sm:$0xff] }
  0x14   : > { %279 = vst [vmem:[%s450_s25 + $0x8] sm:$0xff] %v247_v18  ;;  %v253_v34 = vadd.f32 %v436_v1, %v217_v23  ;;  %v221_v35 = vmul.f32 %v426_v0, %v185_v27  ;;  %v254_v37 = vadd.f32 %v436_v1, %v218_v26  ;;  %v222_v38 = vmul.f32 %v426_v0, %v186_v30  ;;  %v192_v48 = vld [vmem:[%s431_s20 + $0x90] sm:$0xff]  ;;  %v193_v51 = vld [vmem:[%s431_s20 + $0x98] sm:$0xff]  ;;  %v194_v54 = vld [vmem:[%s431_s20 + $0xa0] sm:$0xff] }
  0x15   : > { %280 = vst [vmem:[%s450_s25 + $0x10] sm:$0xff] %v248_v19  ;;  %v255_v40 = vadd.f32 %v436_v1, %v219_v29  ;;  %v223_v41 = vmul.f32 %v426_v0, %v187_v33  ;;  %v256_v43 = vadd.f32 %v436_v1, %v220_v32  ;;  %v224_v44 = vmul.f32 %v426_v0, %v188_v36  ;;  %v195_v57 = vld [vmem:[%s431_s20 + $0xa8] sm:$0xff]  ;;  %v196_v60 = vld [vmem:[%s431_s20 + $0xb0] sm:$0xff]  ;;  %v197_v63 = vld [vmem:[%s431_s20 + $0xb8] sm:$0xff] }
  0x16   : > { %281 = vst [vmem:[%s450_s25 + $0x18] sm:$0xff] %v249_v22  ;;  %v257_v46 = vadd.f32 %v436_v1, %v221_v35  ;;  %v225_v47 = vmul.f32 %v426_v0, %v189_v39  ;;  %v258_v49 = vadd.f32 %v436_v1, %v222_v38  ;;  %v226_v50 = vmul.f32 %v426_v0, %v190_v42  ;;  %v198_v4 = vld [vmem:[%s431_s20 + $0xc0] sm:$0xff]  ;;  %v199_v7 = vld [vmem:[%s431_s20 + $0xc8] sm:$0xff]  ;;  %v200_v10 = vld [vmem:[%s431_s20 + $0xd0] sm:$0xff] }
  0x17   : > { %282 = vst [vmem:[%s450_s25 + $0x20] sm:$0xff] %v250_v25  ;;  %v259_v52 = vadd.f32 %v436_v1, %v223_v41  ;;  %v227_v53 = vmul.f32 %v426_v0, %v191_v45  ;;  %v260_v55 = vadd.f32 %v436_v1, %v224_v44  ;;  %v228_v56 = vmul.f32 %v426_v0, %v192_v48  ;;  %v201_v13 = vld [vmem:[%s431_s20 + $0xd8] sm:$0xff]  ;;  %v202_v16 = vld [vmem:[%s431_s20 + $0xe0] sm:$0xff]  ;;  %v203_v19 = vld [vmem:[%s431_s20 + $0xe8] sm:$0xff] }
  0x18   : > { %283 = vst [vmem:[%s450_s25 + $0x28] sm:$0xff] %v251_v28  ;;  %v261_v58 = vadd.f32 %v436_v1, %v225_v47  ;;  %v229_v59 = vmul.f32 %v426_v0, %v193_v51  ;;  %v262_v61 = vadd.f32 %v436_v1, %v226_v50  ;;  %v230_v62 = vmul.f32 %v426_v0, %v194_v54  ;;  %v204_v22 = vld [vmem:[%s431_s20 + $0xf0] sm:$0xff]  ;;  %v205_v25 = vld [vmem:[%s431_s20 + $0xf8] sm:$0xff] }
  0x19   : > { %284 = vst [vmem:[%s450_s25 + $0x30] sm:$0xff] %v252_v31  ;;  %v263_v2 = vadd.f32 %v436_v1, %v227_v53  ;;  %v231_v3 = vmul.f32 %v426_v0, %v195_v57  ;;  %v264_v5 = vadd.f32 %v436_v1, %v228_v56  ;;  %v232_v6 = vmul.f32 %v426_v0, %v196_v60 }
  0x1a   : > { %285 = vst [vmem:[%s450_s25 + $0x38] sm:$0xff] %v253_v34  ;;  %v265_v8 = vadd.f32 %v436_v1, %v229_v59  ;;  %v233_v9 = vmul.f32 %v426_v0, %v197_v63  ;;  %v266_v11 = vadd.f32 %v436_v1, %v230_v62  ;;  %v234_v12 = vmul.f32 %v426_v0, %v198_v4 }
  0x1b   : > { %286 = vst [vmem:[%s450_s25 + $0x40] sm:$0xff] %v254_v37  ;;  %v267_v14 = vadd.f32 %v436_v1, %v231_v3  ;;  %v235_v15 = vmul.f32 %v426_v0, %v199_v7  ;;  %v268_v17 = vadd.f32 %v436_v1, %v232_v6  ;;  %v236_v18 = vmul.f32 %v426_v0, %v200_v10 }
  0x1c   : > { %287 = vst [vmem:[%s450_s25 + $0x48] sm:$0xff] %v255_v40  ;;  %v269_v20 = vadd.f32 %v436_v1, %v233_v9  ;;  %v237_v21 = vmul.f32 %v426_v0, %v201_v13  ;;  %v270_v23 = vadd.f32 %v436_v1, %v234_v12  ;;  %v238_v24 = vmul.f32 %v426_v0, %v202_v16 }
  0x1d   : > { %288 = vst [vmem:[%s450_s25 + $0x50] sm:$0xff] %v256_v43  ;;  %v271_v26 = vadd.f32 %v436_v1, %v235_v15  ;;  %v239_v27 = vmul.f32 %v426_v0, %v203_v19  ;;  %v272_v28 = vadd.f32 %v436_v1, %v236_v18  ;;  %v240_v29 = vmul.f32 %v426_v0, %v204_v22 }
  0x1e   : > { %289 = vst [vmem:[%s450_s25 + $0x58] sm:$0xff] %v257_v46  ;;  %v273_v30 = vadd.f32 %v436_v1, %v237_v21  ;;  %v241_v31 = vmul.f32 %v426_v0, %v205_v25  ;;  %v274_v32 = vadd.f32 %v436_v1, %v238_v24 }
  0x1f   : > { %290 = vst [vmem:[%s450_s25 + $0x60] sm:$0xff] %v258_v49  ;;  %v275_v33 = vadd.f32 %v436_v1, %v239_v27  ;;  %v276_v34 = vadd.f32 %v436_v1, %v240_v29 }
  0x20   : > { %291 = vst [vmem:[%s450_s25 + $0x68] sm:$0xff] %v259_v52  ;;  %v277_v35 = vadd.f32 %v436_v1, %v241_v31 }
  0x21   : > { %292 = vst [vmem:[%s450_s25 + $0x70] sm:$0xff] %v260_v55 }
  0x22   : > { %293 = vst [vmem:[%s450_s25 + $0x78] sm:$0xff] %v261_v58 }
  0x23   : > { %294 = vst [vmem:[%s450_s25 + $0x80] sm:$0xff] %v262_v61 }
  0x24   : > { %295 = vst [vmem:[%s450_s25 + $0x88] sm:$0xff] %v263_v2 }
  0x25   : > { %296 = vst [vmem:[%s450_s25 + $0x90] sm:$0xff] %v264_v5 }
  0x26   : > { %297 = vst [vmem:[%s450_s25 + $0x98] sm:$0xff] %v265_v8 }
  0x27   : > { %298 = vst [vmem:[%s450_s25 + $0xa0] sm:$0xff] %v266_v11 }
  0x28   : > { %299 = vst [vmem:[%s450_s25 + $0xa8] sm:$0xff] %v267_v14 }
  0x29   : > { %300 = vst [vmem:[%s450_s25 + $0xb0] sm:$0xff] %v268_v17 }
  0x2a   : > { %301 = vst [vmem:[%s450_s25 + $0xb8] sm:$0xff] %v269_v20 }
  0x2b   : > { %302 = vst [vmem:[%s450_s25 + $0xc0] sm:$0xff] %v270_v23 }
  0x2c   : > { %303 = vst [vmem:[%s450_s25 + $0xc8] sm:$0xff] %v271_v26 }
  0x2d   : > { %304 = vst [vmem:[%s450_s25 + $0xd0] sm:$0xff] %v272_v28 }
  0x2e   : > { %305 = vst [vmem:[%s450_s25 + $0xd8] sm:$0xff] %v273_v30 }
  0x2f   : > { %306 = vst [vmem:[%s450_s25 + $0xe0] sm:$0xff] %v274_v32 }
  0x30   : > { %307 = vst [vmem:[%s450_s25 + $0xe8] sm:$0xff] %v275_v33 }
  0x31   : > { %308 = vst [vmem:[%s450_s25 + $0xf0] sm:$0xff] %v276_v34 }
  0x32   : > { %309 = vst [vmem:[%s450_s25 + $0xf8] sm:$0xff] %v277_v35 }
  0x33 PF: > { %s13_s12 = sadd.s32 1, %s393_s12  }
  0x34   : > { %p10_p4 = scmp.ge.s32.totalorder %s13_s12, 4  }
  0x36   :  { %12 = sbr.rel (!%p10_p4) target bundleno = 1 (0x1), region = 62 }

// kernel: basic_conv2d.2
= control target key start
LH: loop header
LB: loop body
LE: loop exit
PB: predicated region body
PF: predicated region fallthrough
CT: control target
= control target key end

     0   :  { %s912_s15 = smov 0   ;;  %s1141_s0 = inlined_call_operand.vmem [shape: bf16[512,36], index: 0, kind: input, shape index: {}]   ;;  %s1142_s1 = inlined_call_operand.vmem [shape: bf16[36,128], index: 1, kind: input, shape index: {}]   ;;  %s1143_s2 = inlined_call_operand.vmem [shape: f32[512,128], index: 2, kind: output, shape index: {0}]   ;;  %s1144_s3 = inlined_call_operand.vmem [shape: f32[16,128], index: 3, kind: output, shape index: {1}]   ;;  %s1145_s4 = inlined_call_operand.vmem [shape: f32[16,128], index: 4, kind: output, shape index: {2}]  }
   0x1 LB: > { %s918_s16 = sadd.s32 4294967295, %s885_s15   ;;  %p747_p0 = scmp.ge.s32.totalorder %s885_s15, 1  ;;  %s885_s15 = sphi %s912_s15, %s15_s15  }
   0x2   : > { %p168_p1 = scmp.lt.s32.totalorder %s885_s15, 3 }
   0x4   : > { %p169_p2 = pnand %p747_p0, %p168_p1 }
   0x5   : > { %s748_s19 = sshll.u32 (!%p169_p2), %s918_s16, 5  ;;  %p214_p4 = scmp.lt.s32.totalorder (!%p169_p2), %s918_s16, 1 }
   0x6   : > { %172 = sbr.rel (%p169_p2) target bundleno = 263 (0x107), region = 28  ;;  %p203_p3 = scmp.lt.s32.totalorder (!%p169_p2), %s748_s19, 63 }
   0xb   : > { %v259_v0 = vld [vmem:[%s1142_s1 + $0x10] sm:$0x3]  ;;  %vm404_vm0 = vcmask 1041408   ;;  %s1147_s19 = smov (!%p203_p3, %s748_s19), 63  ;;  %v861_v4 = vld [vmem:[%s1142_s1 + $0x8] sm:$0xff]  ;;  %v860_v5 = vld [vmem:[%s1142_s1] sm:$0xff] }
   0xc   : > { %v349_v1 = vunpack.c.l.b16 %v259_v0  ;;  %s749_s22 = sshll.u32 %s1147_s19, 2  ;;  %vm355_vm1 = vcmask 293888   ;;  %s751_s28 = sshll.u32 %s1147_s19, 3 }
   0xd   : > { %s938_s27 = scalar_lea.vmem %s1141_s0, %s749_s22  ;;  %s976_s5 = scalar_lea.vmem %s1143_s2, %s751_s28 }
   0xe   : > { %v352_v2 = vpack.c.b16 %v349_v1, %v349_v1  ;;  %v844_v6 = vld [vmem:[%s938_s27] sm:$0xff]  ;;  %v845_v10 = vld [vmem:[%s938_s27 + $0x8] sm:$0xff]  ;;  %v846_v14 = vld [vmem:[%s938_s27 + $0x10] sm:$0xff]  ;;  %s1149_s16 = smov (!%p214_p4, %s918_s16), 1 }
   0xf   : > { %v848_v7 = vld [vmem:[%s938_s27 + $0x20] sm:$0xff]  ;;  %v849_v11 = vld [vmem:[%s938_s27 + $0x28] sm:$0xff]  ;;  %v850_v15 = vld [vmem:[%s938_s27 + $0x30] sm:$0xff]  ;;  %s752_s6 = sshll.u32 %s1149_s16, 3 }
  0x10   : > { %v406_v3 = vsel %vm404_vm0, %v352_v2, 0  ;;  %v852_v8 = vld [vmem:[%s938_s27 + $0x40] sm:$0xff]  ;;  %v853_v12 = vld [vmem:[%s938_s27 + $0x48] sm:$0xff]  ;;  %v854_v16 = vld [vmem:[%s938_s27 + $0x50] sm:$0xff]  ;;  %s217_s9 = scalar_lea.vmem %s1144_s3, %s752_s6  ;;  %s221_s12 = scalar_lea.vmem %s1145_s4, %s752_s6 }
  0x11   : > { %413 = vmatpush.bf16.msra.mxu0 %v406_v3  ;;  %862 = vmatpush.bf16.msra.mxu1 %v406_v3  ;;  %v856_v9 = vld [vmem:[%s938_s27 + $0x60] sm:$0xff]  ;;  %v857_v13 = vld [vmem:[%s938_s27 + $0x68] sm:$0xff]  ;;  %v858_v17 = vld [vmem:[%s938_s27 + $0x70] sm:$0xff] }
  0x12   : > { %863 = vmatpush.bf16.msra.mxu2 %v406_v3  ;;  %864 = vmatpush.bf16.msra.mxu3 %v406_v3  ;;  %v847_v18 = vld [vmem:[%s938_s27 + $0x18] sm:$0xff] }
  0x13   : > { %v851_v19 = vld [vmem:[%s938_s27 + $0x38] sm:$0xff] }
  0x14   : > { %v855_v20 = vld [vmem:[%s938_s27 + $0x58] sm:$0xff] }
  0x15   : > { %414 = vmatpush.bf16.msra.mxu0 %v861_v4  ;;  %865 = vmatpush.bf16.msra.mxu1 %v861_v4  ;;  %v859_v21 = vld [vmem:[%s938_s27 + $0x78] sm:$0xff] }
  0x16   : > { %866 = vmatpush.bf16.msra.mxu2 %v861_v4  ;;  %867 = vmatpush.bf16.msra.mxu3 %v861_v4 }
  0x19   : > { %415 = vmatpush.bf16.msra.mxu0 %v860_v5  ;;  %868 = vmatpush.bf16.msra.mxu1 %v860_v5 }
  0x1a   : > { %869 = vmatpush.bf16.msra.mxu2 %v860_v5  ;;  %870 = vmatpush.bf16.msra.mxu3 %v860_v5 }
  0x1c   : > { %826 = vmatmul.msk.bf16.vlgmr.msra.gmra.mxu0 %vm355_vm1, %v844_v6  ;;  %830 = vmatmul.msk.bf16.vlgmr.msra.gmra.mxu1 %vm355_vm1, %v848_v7 }
  0x1d   : > { %834 = vmatmul.msk.bf16.vlgmr.msra.gmra.mxu2 %vm355_vm1, %v852_v8  ;;  %838 = vmatmul.msk.bf16.vlgmr.msra.gmra.mxu3 %vm355_vm1, %v856_v9 }
  0x2c   : > { %827 = vmatmul.msk.bf16.gmra.mxu0 %vm355_vm1, %v845_v10  ;;  %831 = vmatmul.msk.bf16.gmra.mxu1 %vm355_vm1, %v849_v11 }
  0x2d   : > { %835 = vmatmul.msk.bf16.gmra.mxu2 %vm355_vm1, %v853_v12  ;;  %839 = vmatmul.msk.bf16.gmra.mxu3 %vm355_vm1, %v857_v13 }
  0x3c   : > { %828 = vmatmul.msk.bf16.gmra.mxu0 %vm355_vm1, %v846_v14  ;;  %832 = vmatmul.msk.bf16.gmra.mxu1 %vm355_vm1, %v850_v15 }
  0x3d   : > { %836 = vmatmul.msk.bf16.gmra.mxu2 %vm355_vm1, %v854_v16  ;;  %840 = vmatmul.msk.bf16.gmra.mxu3 %vm355_vm1, %v858_v17 }
  0x4c   : > { %829 = vmatmul.msk.bf16.gmra.mxu0 %vm355_vm1, %v847_v18  ;;  %833 = vmatmul.msk.bf16.gmra.mxu1 %vm355_vm1, %v851_v19 }
  0x4d   : > { %837 = vmatmul.msk.bf16.gmra.mxu2 %vm355_vm1, %v855_v20  ;;  %841 = vmatmul.msk.bf16.gmra.mxu3 %vm355_vm1, %v859_v21 }
  0x99   : > { %v417_v22 = vpop.f32.mrf.mxu0  ;;  %v978_v23 = vpop.f32.mrf.mxu1 }
  0x9a   : > { %497 = vst [vmem:[%s976_s5] sm:$0xff] %v417_v22  ;;  %v561_v45 = vmul.f32 %v417_v22, %v417_v22  ;;  %v569_v9 = vmul.f32 %v978_v23, %v978_v23 }
  0x9b   : > { %505 = vst [vmem:[%s976_s5 + $0x40] sm:$0xff] %v978_v23 }
  0xa0   : > { %v983_v24 = vpop.f32.mrf.mxu2  ;;  %v990_v27 = vpop.f32.mrf.mxu3 }
  0xa1   : > { %v419_v25 = vpop.f32.mrf.mxu0  ;;  %v985_v26 = vpop.f32.mrf.mxu1  ;;  %513 = vst [vmem:[%s976_s5 + $0x80] sm:$0xff] %v983_v24 }
  0xa2   : > { %498 = vst [vmem:[%s976_s5 + $0x8] sm:$0xff] %v419_v25  ;;  %v562_v44 = vmul.f32 %v419_v25, %v419_v25  ;;  %v529_v46 = vadd.f32 %v419_v25, %v417_v22  ;;  %v570_v12 = vmul.f32 %v985_v26, %v985_v26 }
  0xa3   : > { %506 = vst [vmem:[%s976_s5 + $0x48] sm:$0xff] %v985_v26 }
  0xa4   : > { %521 = vst [vmem:[%s976_s5 + $0xc0] sm:$0xff] %v990_v27  ;;  %v593_v48 = vadd.f32 %v562_v44, %v561_v45 }
  0xa8   : > { %v996_v28 = vpop.f32.mrf.mxu2  ;;  %v1003_v31 = vpop.f32.mrf.mxu3 }
  0xa9   : > { %v422_v29 = vpop.f32.mrf.mxu0  ;;  %v998_v30 = vpop.f32.mrf.mxu1  ;;  %514 = vst [vmem:[%s976_s5 + $0x88] sm:$0xff] %v996_v28 }
  0xaa   : > { %499 = vst [vmem:[%s976_s5 + $0x10] sm:$0xff] %v422_v29  ;;  %v563_v47 = vmul.f32 %v422_v29, %v422_v29  ;;  %v530_v49 = vadd.f32 %v529_v46, %v422_v29  ;;  %v571_v15 = vmul.f32 %v998_v30, %v998_v30 }
  0xab   : > { %507 = vst [vmem:[%s976_s5 + $0x50] sm:$0xff] %v998_v30 }
  0xac   : > { %522 = vst [vmem:[%s976_s5 + $0xc8] sm:$0xff] %v1003_v31  ;;  %v594_v54 = vadd.f32 %v593_v48, %v563_v47  ;;  %v577_v47 = vmul.f32 %v983_v24, %v983_v24 }
  0xb0   : > { %v1009_v32 = vpop.f32.mrf.mxu2  ;;  %v1016_v35 = vpop.f32.mrf.mxu3 }
  0xb1   : > { %v424_v33 = vpop.f32.mrf.mxu0  ;;  %v1011_v34 = vpop.f32.mrf.mxu1  ;;  %515 = vst [vmem:[%s976_s5 + $0x90] sm:$0xff] %v1009_v32 }
  0xb2   : > { %500 = vst [vmem:[%s976_s5 + $0x18] sm:$0xff] %v424_v33  ;;  %v564_v50 = vmul.f32 %v424_v33, %v424_v33  ;;  %v531_v55 = vadd.f32 %v530_v49, %v424_v33  ;;  %v572_v19 = vmul.f32 %v1011_v34, %v1011_v34 }
  0xb3   : > { %508 = vst [vmem:[%s976_s5 + $0x58] sm:$0xff] %v1011_v34 }
  0xb4   : > { %523 = vst [vmem:[%s976_s5 + $0xd0] sm:$0xff] %v1016_v35  ;;  %v595_v58 = vadd.f32 %v594_v54, %v564_v50 }
  0xb8   : > { %v1022_v36 = vpop.f32.mrf.mxu2  ;;  %v1029_v39 = vpop.f32.mrf.mxu3 }
  0xb9   : > { %v427_v37 = vpop.f32.mrf.mxu0  ;;  %v1024_v38 = vpop.f32.mrf.mxu1  ;;  %516 = vst [vmem:[%s976_s5 + $0x98] sm:$0xff] %v1022_v36 }
  0xba   : > { %501 = vst [vmem:[%s976_s5 + $0x20] sm:$0xff] %v427_v37  ;;  %v565_v56 = vmul.f32 %v427_v37, %v427_v37  ;;  %v532_v59 = vadd.f32 %v531_v55, %v427_v37  ;;  %v580_v55 = vmul.f32 %v1022_v36, %v1022_v36 }
  0xbb   : > { %509 = vst [vmem:[%s976_s5 + $0x60] sm:$0xff] %v1024_v38 }
  0xbc   : > { %524 = vst [vmem:[%s976_s5 + $0xd8] sm:$0xff] %v1029_v39  ;;  %v596_v61 = vadd.f32 %v595_v58, %v565_v56 }
  0xc0   : > { %v1035_v40 = vpop.f32.mrf.mxu2  ;;  %v1042_v43 = vpop.f32.mrf.mxu3 }
  0xc1   : > { %v429_v41 = vpop.f32.mrf.mxu0  ;;  %v1037_v42 = vpop.f32.mrf.mxu1  ;;  %517 = vst [vmem:[%s976_s5 + $0xa0] sm:$0xff] %v1035_v40 }
  0xc2   : > { %502 = vst [vmem:[%s976_s5 + $0x28] sm:$0xff] %v429_v41  ;;  %v566_v60 = vmul.f32 %v429_v41, %v429_v41  ;;  %v533_v62 = vadd.f32 %v532_v59, %v429_v41  ;;  %v574_v29 = vmul.f32 %v1037_v42, %v1037_v42 }
  0xc3   : > { %510 = vst [vmem:[%s976_s5 + $0x68] sm:$0xff] %v1037_v42 }
  0xc4   : > { %525 = vst [vmem:[%s976_s5 + $0xe0] sm:$0xff] %v1042_v43  ;;  %v597_v0 = vadd.f32 %v596_v61, %v566_v60 }
  0xc8   : > { %v1048_v51 = vpop.f32.mrf.mxu2  ;;  %v1053_v57 = vpop.f32.mrf.mxu3 }
  0xc9   : > { %v432_v52 = vpop.f32.mrf.mxu0  ;;  %v452_v53 = vpop.f32.mrf.mxu1  ;;  %518 = vst [vmem:[%s976_s5 + $0xa8] sm:$0xff] %v1048_v51  ;;  %v582_v61 = vmul.f32 %v1048_v51, %v1048_v51 }
  0xca   : > { %503 = vst [vmem:[%s976_s5 + $0x30] sm:$0xff] %v432_v52  ;;  %v567_v63 = vmul.f32 %v432_v52, %v432_v52  ;;  %v534_v1 = vadd.f32 %v533_v62, %v432_v52  ;;  %v575_v41 = vmul.f32 %v452_v53, %v452_v53 }
  0xcb   : > { %511 = vst [vmem:[%s976_s5 + $0x70] sm:$0xff] %v452_v53 }
  0xcc   : > { %526 = vst [vmem:[%s976_s5 + $0xe8] sm:$0xff] %v1053_v57  ;;  %v598_v5 = vadd.f32 %v597_v0, %v567_v63 }
  0xd0   : > { %v472_v2 = vpop.f32.mrf.mxu2  ;;  %v1060_v8 = vpop.f32.mrf.mxu3 }
  0xd1   : > { %v434_v3 = vpop.f32.mrf.mxu0  ;;  %v454_v4 = vpop.f32.mrf.mxu1  ;;  %519 = vst [vmem:[%s976_s5 + $0xb0] sm:$0xff] %v472_v2  ;;  %v583_v0 = vmul.f32 %v472_v2, %v472_v2 }
  0xd2   : > { %504 = vst [vmem:[%s976_s5 + $0x38] sm:$0xff] %v434_v3  ;;  %v535_v6 = vadd.f32 %v534_v1, %v434_v3  ;;  %v568_v7 = vmul.f32 %v434_v3, %v434_v3  ;;  %v576_v46 = vmul.f32 %v454_v4, %v454_v4 }
  0xd3   : > { %512 = vst [vmem:[%s976_s5 + $0x78] sm:$0xff] %v454_v4 }
  0xd4   : > { %v536_v10 = vadd.f32 %v535_v6, %v978_v23  ;;  %v599_v11 = vadd.f32 %v598_v5, %v568_v7  ;;  %527 = vst [vmem:[%s976_s5 + $0xf0] sm:$0xff] %v1060_v8  ;;  %v573_v23 = vmul.f32 %v1024_v38, %v1024_v38  ;;  %v586_v6 = vmul.f32 %v1003_v31, %v1003_v31 }
  0xd6   : > { %v537_v13 = vadd.f32 %v536_v10, %v985_v26  ;;  %v600_v14 = vadd.f32 %v599_v11, %v569_v9  ;;  %v588_v11 = vmul.f32 %v1029_v39, %v1029_v39 }
  0xd8   : > { %v538_v16 = vadd.f32 %v537_v13, %v998_v30  ;;  %v601_v17 = vadd.f32 %v600_v14, %v570_v12  ;;  %v474_v18 = vpop.f32.mrf.mxu2  ;;  %v1078_v22 = vpop.f32.mrf.mxu3  ;;  %v589_v13 = vmul.f32 %v1042_v43, %v1042_v43 }
  0xd9   : > { %520 = vst [vmem:[%s976_s5 + $0xb8] sm:$0xff] %v474_v18 }
  0xda   : > { %v602_v20 = vadd.f32 %v601_v17, %v571_v15  ;;  %v539_v21 = vadd.f32 %v538_v16, %v1011_v34  ;;  %528 = vst [vmem:[%s976_s5 + $0xf8] sm:$0xff] %v1078_v22  ;;  %v590_v16 = vmul.f32 %v1053_v57, %v1053_v57 }
  0xdc   : > { %v540_v25 = vadd.f32 %v539_v21, %v1024_v38  ;;  %v603_v26 = vadd.f32 %v602_v20, %v572_v19  ;;  %v578_v38 = vmul.f32 %v996_v28, %v996_v28  ;;  %v592_v20 = vmul.f32 %v1078_v22, %v1078_v22 }
  0xde   : > { %v541_v30 = vadd.f32 %v540_v25, %v1037_v42  ;;  %v604_v33 = vadd.f32 %v603_v26, %v573_v23  ;;  %v579_v42 = vmul.f32 %v1009_v32, %v1009_v32 }
  0xe0   : > { %v542_v37 = vadd.f32 %v541_v30, %v452_v53  ;;  %v605_v44 = vadd.f32 %v604_v33, %v574_v29 }
  0xe2   : > { %v606_v34 = vadd.f32 %v605_v44, %v575_v41  ;;  %v543_v45 = vadd.f32 %v542_v37, %v454_v4  ;;  %v585_v4 = vmul.f32 %v990_v27, %v990_v27 }
  0xe4   : > { %v544_v48 = vadd.f32 %v543_v45, %v983_v24  ;;  %v607_v49 = vadd.f32 %v606_v34, %v576_v46  ;;  %v581_v24 = vmul.f32 %v1035_v40, %v1035_v40 }
  0xe6   : > { %v545_v50 = vadd.f32 %v544_v48, %v996_v28  ;;  %v608_v52 = vadd.f32 %v607_v49, %v577_v47 }
  0xe8   : > { %v546_v53 = vadd.f32 %v545_v50, %v1009_v32  ;;  %v609_v54 = vadd.f32 %v608_v52, %v578_v38 }
  0xea   : > { %v610_v56 = vadd.f32 %v609_v54, %v579_v42  ;;  %v547_v58 = vadd.f32 %v546_v53, %v1022_v36  ;;  %v584_v36 = vmul.f32 %v474_v18, %v474_v18 }
  0xec   : > { %v548_v59 = vadd.f32 %v547_v58, %v1035_v40  ;;  %v611_v60 = vadd.f32 %v610_v56, %v580_v55 }
  0xee   : > { %v549_v28 = vadd.f32 %v548_v59, %v1048_v51  ;;  %v612_v32 = vadd.f32 %v611_v60, %v581_v24 }
  0xf0   : > { %v613_v62 = vadd.f32 %v612_v32, %v582_v61  ;;  %v550_v63 = vadd.f32 %v549_v28, %v472_v2  ;;  %v587_v2 = vmul.f32 %v1016_v35, %v1016_v35 }
  0xf2   : > { %v614_v1 = vadd.f32 %v613_v62, %v583_v0  ;;  %v551_v3 = vadd.f32 %v550_v63, %v474_v18 }
  0xf4   : > { %v552_v40 = vadd.f32 %v551_v3, %v990_v27  ;;  %v615_v5 = vadd.f32 %v614_v1, %v584_v36 }
  0xf6   : > { %v553_v7 = vadd.f32 %v552_v40, %v1003_v31  ;;  %v616_v51 = vadd.f32 %v615_v5, %v585_v4 }
  0xf8   : > { %v554_v9 = vadd.f32 %v553_v7, %v1016_v35  ;;  %v617_v10 = vadd.f32 %v616_v51, %v586_v6 }
  0xfa   : > { %v618_v12 = vadd.f32 %v617_v10, %v587_v2  ;;  %v555_v27 = vadd.f32 %v554_v9, %v1029_v39  ;;  %v591_v39 = vmul.f32 %v1060_v8, %v1060_v8 }
  0xfc   : > { %v556_v31 = vadd.f32 %v555_v27, %v1042_v43  ;;  %v619_v14 = vadd.f32 %v618_v12, %v588_v11 }
  0xfe   : > { %v557_v15 = vadd.f32 %v556_v31, %v1053_v57  ;;  %v620_v35 = vadd.f32 %v619_v14, %v589_v13 }
 0x100   : > { %v621_v17 = vadd.f32 %v620_v35, %v590_v16  ;;  %v558_v18 = vadd.f32 %v557_v15, %v1060_v8 }
 0x102   : > { %v622_v19 = vadd.f32 %v621_v17, %v591_v39  ;;  %v559_v43 = vadd.f32 %v558_v18, %v1078_v22 }
 0x104   : > { %560 = vst [vmem:[%s217_s9] sm:$0xff] %v559_v43  ;;  %v623_v57 = vadd.f32 %v622_v19, %v592_v20 }
 0x106   : > { %624 = vst [vmem:[%s221_s12] sm:$0xff] %v623_v57 }
 0x107 PF: > { %s15_s15 = sadd.s32 1, %s885_s15  }
 0x108   : > { %p12_p5 = scmp.ge.s32.totalorder %s15_s15, 4  }
 0x10a   :  { %14 = sbr.rel (!%p12_p5) target bundleno = 1 (0x1), region = 82 }

</bundles_post_ra>
